<compile_context>
chip_gen: v6e
topology: v6e:2x2x1
jax: 0.10.0
libtpu: 0.0.40
codegen_flags: <defaults>
</compile_context>

<pallas_src>
import jax
import jax.numpy as jnp
from jax.experimental import pallas as pl
from jax.experimental.pallas import tpu as pltpu


def _wordle_mlp_kernel(x_ref, w1_ref, b1_ref, w2_ref, b2_ref, o_ref):
    # fc1 on the MXU with f32 accumulation; bias + ReLU in f32 on the VPU.
    h = jnp.dot(x_ref[...], w1_ref[...], preferred_element_type=jnp.float32)
    h = jnp.maximum(h + b1_ref[...], 0.0)
    # fc2: cast only the MXU LHS to the weight dtype (bf16 fast path; no-op
    # for f32 weights), keep the accumulator and bias add in f32.
    y = jnp.dot(h.astype(w2_ref.dtype), w2_ref[...],
                preferred_element_type=jnp.float32)
    o_ref[...] = (y + b2_ref[...]).astype(o_ref.dtype)


def _round_up(x, m):
    return (x + m - 1) // m * m


def wordle_agent_forward(state, w1, b1, w2, b2, *,
                         compute_dtype=jnp.bfloat16,
                         max_batch_tile=512, max_action_tile=2048):
    """state: (B, state_size); w1: (state_size, 256); b1: (256,);
    w2: (256, action_size); b2: (action_size,). Returns (B, action_size)
    in state.dtype. Matmuls run in `compute_dtype` with f32 accumulation."""
    B, S = state.shape
    H = w1.shape[1]
    A = w2.shape[1]
    out_dtype = state.dtype

    max_batch_tile = max(_round_up(max_batch_tile, 8), 8)
    max_action_tile = max(_round_up(max_action_tile, 256), 256)

    # ---- Action dim: pad UP to a multiple of the tile (multiple of 256 for
    #      the 2x256^2 MXU); zero weight columns / zero bias, sliced off. ----
    A_pad = _round_up(max(A, 256), 256)
    if A_pad <= max_action_tile:
        TA = A_pad
    else:
        TA = max_action_tile
        A_pad = _round_up(A, TA)

    # ---- Batch dim: pad to a multiple of 8 (sublane-dense stores). ----
    B_pad = _round_up(B, 8)
    if B_pad <= max_batch_tile:
        TB = B_pad
    else:
        TB = max_batch_tile
        B_pad = _round_up(B, TB)

    # ---- State dim: pad to a multiple of 128 (lane-dense fc1 LHS). ----
    S_pad = _round_up(max(S, 128), 128)

    xp = jnp.pad(state, ((0, B_pad - B), (0, S_pad - S))).astype(compute_dtype)
    w1p = jnp.pad(w1, ((0, S_pad - S), (0, 0))).astype(compute_dtype)
    w2p = jnp.pad(w2, ((0, 0), (0, A_pad - A))).astype(compute_dtype)
    b1_2d = b1.astype(jnp.float32).reshape(1, H)
    b2_2d = jnp.pad(b2, (0, A_pad - A)).astype(jnp.float32).reshape(1, A_pad)

    # Grid: action tiles OUTER, batch tiles INNER -> each W2 tile is fetched
    # from HBM once and reused across all batch tiles; the (cheap) x tiles are
    # re-streamed per action tile.  No cross-iteration state -> both axes are
    # "parallel" (megacore-friendly on v7x for any shape).
    n_a, n_b = A_pad // TA, B_pad // TB
    grid = (n_a, n_b)

    cdt = jnp.dtype(compute_dtype).itemsize
    odt = jnp.dtype(out_dtype).itemsize
    flops = 2 * B_pad * (S_pad * H + H * A_pad)
    bytes_accessed = (
        n_a * B_pad * S_pad * cdt      # x re-streamed once per action tile
        + S_pad * H * cdt + H * 4      # W1 + b1 (resident)
        + H * A_pad * cdt + A_pad * 4  # W2 + b2 (each tile fetched once)
        + B_pad * A_pad * odt)         # output

    out = pl.pallas_call(
        _wordle_mlp_kernel,
        out_shape=jax.ShapeDtypeStruct((B_pad, A_pad), out_dtype),
        grid=grid,
        in_specs=[
            pl.BlockSpec((TB, S_pad), lambda i, j: (j, 0)),   # x: per batch tile
            pl.BlockSpec((S_pad, H), lambda i, j: (0, 0)),    # W1: VMEM-resident
            pl.BlockSpec((1, H), lambda i, j: (0, 0)),        # b1: VMEM-resident
            pl.BlockSpec((H, TA), lambda i, j: (0, i)),       # W2: per action tile
            pl.BlockSpec((1, TA), lambda i, j: (0, i)),       # b2: per action tile
        ],
        out_specs=pl.BlockSpec((TB, TA), lambda i, j: (j, i)),
        compiler_params=pltpu.CompilerParams(
            dimension_semantics=("parallel", "parallel")),
        cost_estimate=pl.CostEstimate(
            flops=flops, transcendentals=0, bytes_accessed=bytes_accessed),
    )(xp, w1p, b1_2d, w2p, b2_2d)

    return out[:B, :A]


def init_wordle_agent_params(key, state_size, action_size, hidden=256,
                             dtype=jnp.float32):
    """Deterministic init matching nn.Linear's U(-1/sqrt(fan_in), 1/sqrt(fan_in)).
    Weights are returned already transposed to (in, out) layout."""
    k1, k2, k3, k4 = jax.random.split(key, 4)
    bound1 = 1.0 / jnp.sqrt(jnp.asarray(state_size, dtype))
    bound2 = 1.0 / jnp.sqrt(jnp.asarray(hidden, dtype))
    w1 = jax.random.uniform(k1, (state_size, hidden), dtype, -bound1, bound1)
    b1 = jax.random.uniform(k2, (hidden,), dtype, -bound1, bound1)
    w2 = jax.random.uniform(k3, (hidden, action_size), dtype, -bound2, bound2)
    b2 = jax.random.uniform(k4, (action_size,), dtype, -bound2, bound2)
    return w1, b1, w2, b2


if __name__ == "__main__":
    key = jax.random.PRNGKey(0)
    batch = 2
    state_size = 32     # encoded Wordle game state (small synthetic size)
    action_size = 64    # candidate-word action space (small synthetic size)

    kp, kx = jax.random.split(key)
    w1, b1, w2, b2 = init_wordle_agent_params(kp, state_size, action_size)
    state = jax.random.normal(kx, (batch, state_size), jnp.float32)

    ref = jnp.maximum(state @ w1 + b1, 0.0) @ w2 + b2

    # Fast bf16-MXU path (default): f32 accumulation, looser tolerance.
    out_bf16 = jax.block_until_ready(wordle_agent_forward(state, w1, b1, w2, b2))
    assert out_bf16.shape == (batch, action_size)
    assert out_bf16.dtype == state.dtype
    assert jnp.allclose(out_bf16, ref, atol=2e-2, rtol=2e-2)

    # f32 compute path: bit-faithful check against the reference forward.
    out_f32 = jax.block_until_ready(
        wordle_agent_forward(state, w1, b1, w2, b2, compute_dtype=jnp.float32))
    assert jnp.allclose(out_f32, ref, atol=1e-5, rtol=1e-5)

    print("KERNEL_OK")
</pallas_src>

<mosaic_0001>
module attributes {stable_mosaic.version = 11 : i64} {
  func.func @_wordle_mlp_kernel(%arg0: i32, %arg1: i32, %arg2: memref<8x128xbf16, #tpu.memory_space<vmem>>, %arg3: memref<128x256xbf16, #tpu.memory_space<vmem>>, %arg4: memref<1x256xf32, #tpu.memory_space<vmem>>, %arg5: memref<256x256xbf16, #tpu.memory_space<vmem>>, %arg6: memref<1x256xf32, #tpu.memory_space<vmem>>, %arg7: memref<8x256xf32, #tpu.memory_space<vmem>>) attributes {dimension_semantics = [#tpu.dimension_semantics<parallel>, #tpu.dimension_semantics<parallel>], iteration_bounds = array<i64: 1, 1>, scalar_prefetch = 0 : i64, scratch_operands = 0 : i64, tpu.core_type = #tpu.core_type<tc>, window_params = [{transform_indices = @transform_0, window_bounds = array<i64: 8, 128>}, {pipeline_mode = #tpu.pipeline_mode<synchronous>, transform_indices = @transform_1, window_bounds = array<i64: 128, 256>}, {pipeline_mode = #tpu.pipeline_mode<synchronous>, transform_indices = @transform_2, window_bounds = array<i64: 1, 256>}, {transform_indices = @transform_3, window_bounds = array<i64: 256, 256>}, {transform_indices = @transform_4, window_bounds = array<i64: 1, 256>}, {transform_indices = @transform_5, window_bounds = array<i64: 8, 256>}]} {
    %c0 = arith.constant 0 : index
    %c0_0 = arith.constant 0 : index
    %0 = vector.load %arg2[%c0, %c0_0] : memref<8x128xbf16, #tpu.memory_space<vmem>>, vector<8x128xbf16>
    %c0_1 = arith.constant 0 : index
    %c0_2 = arith.constant 0 : index
    %1 = vector.load %arg3[%c0_1, %c0_2] : memref<128x256xbf16, #tpu.memory_space<vmem>>, vector<128x256xbf16>
    %cst = arith.constant dense<0.000000e+00> : vector<8x256xf32>
    %2 = tpu.matmul %0, %1, %cst {dimension_numbers = #tpu.dot_dimension_numbers<[1], [0], [0], [1], [0, 0, 1, 1], [], []>} : vector<8x128xbf16>, vector<128x256xbf16>, vector<8x256xf32> -> vector<8x256xf32>
    %c0_3 = arith.constant 0 : index
    %c0_4 = arith.constant 0 : index
    %3 = vector.load %arg4[%c0_3, %c0_4] : memref<1x256xf32, #tpu.memory_space<vmem>>, vector<1x256xf32>
    %4 = vector.broadcast %3 : vector<1x256xf32> to vector<8x256xf32>
    %5 = arith.addf %2, %4 : vector<8x256xf32>
    %cst_5 = arith.constant 0.000000e+00 : f32
    %6 = vector.broadcast %cst_5 : f32 to vector<8x256xf32>
    %7 = arith.maximumf %5, %6 : vector<8x256xf32>
    %8 = arith.truncf %7 : vector<8x256xf32> to vector<8x256xbf16>
    %c0_6 = arith.constant 0 : index
    %c0_7 = arith.constant 0 : index
    %9 = vector.load %arg5[%c0_6, %c0_7] : memref<256x256xbf16, #tpu.memory_space<vmem>>, vector<256x256xbf16>
    %cst_8 = arith.constant dense<0.000000e+00> : vector<8x256xf32>
    %10 = tpu.matmul %8, %9, %cst_8 {dimension_numbers = #tpu.dot_dimension_numbers<[1], [0], [0], [1], [0, 0, 1, 1], [], []>} : vector<8x256xbf16>, vector<256x256xbf16>, vector<8x256xf32> -> vector<8x256xf32>
    %c0_9 = arith.constant 0 : index
    %c0_10 = arith.constant 0 : index
    %11 = vector.load %arg6[%c0_9, %c0_10] : memref<1x256xf32, #tpu.memory_space<vmem>>, vector<1x256xf32>
    %12 = vector.broadcast %11 : vector<1x256xf32> to vector<8x256xf32>
    %13 = arith.addf %10, %12 : vector<8x256xf32>
    %c0_11 = arith.constant 0 : index
    %c0_12 = arith.constant 0 : index
    %14 = vector.load %arg7[%c0_11, %c0_12] : memref<8x256xf32, #tpu.memory_space<vmem>>, vector<8x256xf32>
    tpu.vector_store %arg7[%c0_11, %c0_12], %13 {strides = array<i32>} : memref<8x256xf32, #tpu.memory_space<vmem>>, vector<8x256xf32>,
    return
  }
  func.func @transform_0(%arg0: i32, %arg1: i32) -> (i32, i32) {
    %c0_i32 = arith.constant 0 : i32
    %c0_i32_0 = arith.constant 0 : i32
    return %arg1, %c0_i32 : i32, i32
  }
  func.func @transform_1(%arg0: i32, %arg1: i32) -> (i32, i32) {
    %c0_i32 = arith.constant 0 : i32
    %c0_i32_0 = arith.constant 0 : i32
    %c0_i32_1 = arith.constant 0 : i32
    return %c0_i32, %c0_i32_0 : i32, i32
  }
  func.func @transform_2(%arg0: i32, %arg1: i32) -> (i32, i32) {
    %c0_i32 = arith.constant 0 : i32
    %c0_i32_0 = arith.constant 0 : i32
    %c0_i32_1 = arith.constant 0 : i32
    return %c0_i32, %c0_i32_0 : i32, i32
  }
  func.func @transform_3(%arg0: i32, %arg1: i32) -> (i32, i32) {
    %c0_i32 = arith.constant 0 : i32
    %c0_i32_0 = arith.constant 0 : i32
    return %c0_i32, %arg0 : i32, i32
  }
  func.func @transform_4(%arg0: i32, %arg1: i32) -> (i32, i32) {
    %c0_i32 = arith.constant 0 : i32
    %c0_i32_0 = arith.constant 0 : i32
    return %c0_i32, %arg0 : i32, i32
  }
  func.func @transform_5(%arg0: i32, %arg1: i32) -> (i32, i32) {
    %c0_i32 = arith.constant 0 : i32
    return %arg1, %arg0 : i32, i32
  }
}

</mosaic_0001>

<bundles_post_ra>
// kernel: tpu_custom_call.1
= control target key start
LH: loop header
LB: loop body
LE: loop exit
PB: predicated region body
PF: predicated region fallthrough
CT: control target
= control target key end

     0   :  { %10 = vsyncpa [#allocation3], 0  ;;  %s746_s0 = inlined_call_operand.hbm [shape: bf16[8,128], index: 0, kind: input, shape index: {}]   ;;  %s747_s1 = inlined_call_operand.hbm [shape: bf16[128,256], index: 1, kind: input, shape index: {}]   ;;  %s748_s2 = inlined_call_operand.vmem [shape: f32[1,256], index: 2, kind: input, shape index: {}]   ;;  %s749_s3 = inlined_call_operand.hbm [shape: bf16[256,256], index: 3, kind: input, shape index: {}]   ;;  %s750_s4 = inlined_call_operand.vmem [shape: f32[1,256], index: 4, kind: input, shape index: {}]   ;;  %s751_s5 = inlined_call_operand.hbm [shape: f32[8,256], index: 5, kind: output, shape index: {}]  }
   0x1   :  { %11 = vsyncpa [#allocation6], 0 }
   0x2   :  { %12 = vsyncpa [#allocation4], 0  ;;  %s691_s18 = smov [#allocation5]  }
   0x3   :  { %s28_s19 = sshll.u32 %s691_s18, 4  ;;  %s29_s19 = int_to_ptr.vmem [resolvable:$true] %s28_s19 }
   0x4   :  { %s613_s20 = scalar_lea.vmem %s29_s19, 2048  ;;  %p618_p1 = scmp.lt.s32.totalorder %s29_s19, %s29_s19 }
   0x5   :  { %p614_p0 = scmp.ne.s32.totalorder %s29_s19, %s613_s20  ;;  %p619_p2 = scmp.lt.s32.totalorder %s613_s20, %s613_s20 }
   0x7   :  { %p620_p3 = por %p619_p2, %p618_p1 }
   0x9   :  { %p621_p4 = pnand %p620_p3, %p614_p0 }
   0xb   :  { %624 = shalt.err (!%p621_p4)
}
   0xc   :  { %s692_s21 = smov 128   ;;  %s693_s22 = smov 8  }
   0xd   :  { %34 = dma.hbm_to_vmem [thread:$0]  %s747_s1, 2048, %s29_s19, [#allocation6], %s692_s21, %s692_s21, %s693_s22  }
   0xe   :  { %s694_s25 = smov [#allocation2]   ;;  %s695_s27 = smov [#allocation7]  }
   0xf   :  { %s19_s26 = sshll.u32 %s694_s25, 4  ;;  %s42_s28 = sshll.u32 %s695_s27, 4  ;;  %s20_s26 = int_to_ptr.vmem [resolvable:$true] %s19_s26  ;;  %s43_s28 = int_to_ptr.vmem [resolvable:$true] %s42_s28 }
  0x10   :  { %s633_s29 = scalar_lea.vmem %s20_s26, 64  ;;  %p638_p6 = scmp.lt.s32.totalorder %s20_s26, %s20_s26 }
  0x11   :  { %p634_p5 = scmp.ne.s32.totalorder %s20_s26, %s633_s29  ;;  %p639_p7 = scmp.lt.s32.totalorder %s633_s29, %s633_s29 }
  0x13   :  { %p640_p8 = por %p639_p7, %p638_p6 }
  0x15   :  { %p641_p9 = pnand %p640_p8, %p634_p5 }
  0x17   :  { %644 = shalt.err (!%p641_p9)
}
  0x18   :  { %22 = dma.hbm_to_vmem [thread:$0]  %s746_s0, 64, %s20_s26, [#allocation3]  }
  0x19   :  { %s653_s7 = scalar_lea.vmem %s43_s28, 4096  ;;  %p658_p11 = scmp.lt.s32.totalorder %s43_s28, %s43_s28 }
  0x1a   :  { %p654_p10 = scmp.ne.s32.totalorder %s43_s28, %s653_s7  ;;  %p659_p12 = scmp.lt.s32.totalorder %s653_s7, %s653_s7 }
  0x1c   :  { %p660_p13 = por %p659_p12, %p658_p11 }
  0x1e   :  { %p661_p0 = pnand %p660_p13, %p654_p10 }
  0x20   :  { %664 = shalt.err (!%p661_p0)
}
  0x21   :  { %48 = dma.hbm_to_vmem [thread:$0]  %s749_s3, 4096, %s43_s28, [#allocation6], %s692_s21, %s692_s21, %s693_s22  }
  0x22   :  { %685 = dma.done.wait [#allocation3], 64  }
  0x23   :  { %686 = vsyncadd [#allocation3], 4294967232 }
  0x24   :  { %687 = dma.done.wait [#allocation6], 6144  }
  0x25   :  { %688 = vsyncadd [#allocation6], 4294961152  ;;  %v696_v0 = vmov 0   ;;  %v533_v1 = vld [vmem:[#allocation5 + $0x74] ss:$8 sps:$4 sm:$0xff]   ;;  %v80_v50 = vlaneseq }
  0x26   :  { %202 = vmatprep.mubr.bf16.mxu0 %v696_v0  ;;  %v535_v2 = vld [vmem:[#allocation5 + $0x70] ss:$8 sps:$4 sm:$0xff]   ;;  %170 = vmatprep.subr.bf16.mxu0 %v533_v1  ;;  %v536_v3 = vld [vmem:[#allocation5 + $0x64] ss:$8 sps:$4 sm:$0xff]   ;;  %v538_v4 = vld [vmem:[#allocation5 + $0x60] ss:$8 sps:$4 sm:$0xff]  }
  0x27   :  { %171 = vmatpush1.bf16.msra.mxu0 %v535_v2  ;;  %v539_v5 = vld [vmem:[#allocation5 + $0x54] ss:$8 sps:$4 sm:$0xff]   ;;  %v541_v6 = vld [vmem:[#allocation5 + $0x50] ss:$8 sps:$4 sm:$0xff]   ;;  %v542_v7 = vld [vmem:[#allocation5 + $0x44] ss:$8 sps:$4 sm:$0xff]  }
  0x28   :  { %172 = vmatprep.subr.bf16.mxu0 %v536_v3  ;;  %v544_v8 = vld [vmem:[#allocation5 + $0x40] ss:$8 sps:$4 sm:$0xff]   ;;  %v545_v9 = vld [vmem:[#allocation5 + $0x34] ss:$8 sps:$4 sm:$0xff]   ;;  %v559_v11 = vld [vmem:[#allocation7 + $0x70] ss:$8 sps:$4 sm:$0xff]  }
  0x29   :  { %v557_v10 = vld [vmem:[#allocation7 + $0x74] ss:$8 sps:$4 sm:$0xff]   ;;  %v560_v12 = vld [vmem:[#allocation7 + $0x64] ss:$8 sps:$4 sm:$0xff]   ;;  %v547_v13 = vld [vmem:[#allocation5 + $0x30] ss:$8 sps:$4 sm:$0xff]  }
  0x2a   :  { %419 = vmatprep.subr.bf16.mxu1 %v557_v10  ;;  %v562_v14 = vld [vmem:[#allocation7 + $0x60] ss:$8 sps:$4 sm:$0xff]   ;;  %v563_v15 = vld [vmem:[#allocation7 + $0x54] ss:$8 sps:$4 sm:$0xff]   ;;  %v548_v16 = vld [vmem:[#allocation5 + $0x24] ss:$8 sps:$4 sm:$0xff]  }
  0x2b   :  { %173 = vmatpush1.bf16.msra.mxu0 %v538_v4  ;;  %420 = vmatpush1.bf16.msra.mxu1 %v559_v11  ;;  %v550_v17 = vld [vmem:[#allocation5 + $0x20] ss:$8 sps:$4 sm:$0xff]   ;;  %v565_v18 = vld [vmem:[#allocation7 + $0x50] ss:$8 sps:$4 sm:$0xff]   ;;  %v566_v19 = vld [vmem:[#allocation7 + $0x44] ss:$8 sps:$4 sm:$0xff]  }
  0x2c   :  { %174 = vmatprep.subr.bf16.mxu0 %v539_v5  ;;  %421 = vmatprep.subr.bf16.mxu1 %v560_v12  ;;  %v551_v20 = vld [vmem:[#allocation5 + $0x14] ss:$8 sps:$4 sm:$0xff]   ;;  %v553_v21 = vld [vmem:[#allocation5 + $0x10] ss:$8 sps:$4 sm:$0xff]   ;;  %v568_v22 = vld [vmem:[#allocation7 + $0x40] ss:$8 sps:$4 sm:$0xff]  }
  0x2d   :  { %v569_v23 = vld [vmem:[#allocation7 + $0x34] ss:$8 sps:$4 sm:$0xff]   ;;  %v554_v24 = vld [vmem:[#allocation5 + $0x4] ss:$8 sps:$4 sm:$0xff]   ;;  %v556_v25 = vld [vmem:[#allocation5] ss:$8 sps:$4 sm:$0xff]  }
  0x2e   :  { %v571_v26 = vld [vmem:[#allocation7 + $0x30] ss:$8 sps:$4 sm:$0xff]   ;;  %v572_v27 = vld [vmem:[#allocation7 + $0x24] ss:$8 sps:$4 sm:$0xff]   ;;  %v574_v28 = vld [vmem:[#allocation7 + $0x20] ss:$8 sps:$4 sm:$0xff]  }
  0x2f   :  { %175 = vmatpush1.bf16.msra.mxu0 %v541_v6  ;;  %422 = vmatpush1.bf16.msra.mxu1 %v562_v14  ;;  %v61_v29 = vld [vmem:[#allocation2] sm:$0xf]  ;;  %v577_v31 = vld [vmem:[#allocation7 + $0x10] ss:$8 sps:$4 sm:$0xff]   ;;  %v578_v32 = vld [vmem:[#allocation7 + $0x4] ss:$8 sps:$4 sm:$0xff]  }
  0x30   :  { %176 = vmatprep.subr.bf16.mxu0 %v542_v7  ;;  %423 = vmatprep.subr.bf16.mxu1 %v563_v15  ;;  %v575_v30 = vld [vmem:[#allocation7 + $0x14] ss:$8 sps:$4 sm:$0xff]   ;;  %v580_v33 = vld [vmem:[#allocation7] ss:$8 sps:$4 sm:$0xff]   ;;  %v583_v35 = vld [vmem:[#allocation7 + $0xf0] ss:$8 sps:$4 sm:$0xff]  }
  0x31   :  { %v581_v34 = vld [vmem:[#allocation7 + $0xf4] ss:$8 sps:$4 sm:$0xff]   ;;  %v584_v36 = vld [vmem:[#allocation7 + $0xe4] ss:$8 sps:$4 sm:$0xff]   ;;  %v586_v37 = vld [vmem:[#allocation7 + $0xe0] ss:$8 sps:$4 sm:$0xff]  }
  0x32   :  { %v587_v38 = vld [vmem:[#allocation7 + $0xd4] ss:$8 sps:$4 sm:$0xff]   ;;  %v589_v39 = vld [vmem:[#allocation7 + $0xd0] ss:$8 sps:$4 sm:$0xff]   ;;  %v590_v40 = vld [vmem:[#allocation7 + $0xc4] ss:$8 sps:$4 sm:$0xff]  }
  0x33   :  { %177 = vmatpush1.bf16.msra.mxu0 %v544_v8  ;;  %424 = vmatpush1.bf16.msra.mxu1 %v565_v18  ;;  %v592_v41 = vld [vmem:[#allocation7 + $0xc0] ss:$8 sps:$4 sm:$0xff]   ;;  %v593_v42 = vld [vmem:[#allocation7 + $0xb4] ss:$8 sps:$4 sm:$0xff]   ;;  %v595_v43 = vld [vmem:[#allocation7 + $0xb0] ss:$8 sps:$4 sm:$0xff]  }
  0x34   :  { %178 = vmatprep.subr.bf16.mxu0 %v545_v9  ;;  %425 = vmatprep.subr.bf16.mxu1 %v566_v19  ;;  %v596_v44 = vld [vmem:[#allocation7 + $0xa4] ss:$8 sps:$4 sm:$0xff]   ;;  %v598_v45 = vld [vmem:[#allocation7 + $0xa0] ss:$8 sps:$4 sm:$0xff]   ;;  %v599_v46 = vld [vmem:[#allocation7 + $0x94] ss:$8 sps:$4 sm:$0xff]  }
  0x35   :  { %v601_v47 = vld [vmem:[#allocation7 + $0x90] ss:$8 sps:$4 sm:$0xff]   ;;  %v602_v48 = vld [vmem:[#allocation7 + $0x84] ss:$8 sps:$4 sm:$0xff]   ;;  %v604_v49 = vld [vmem:[#allocation7 + $0x80] ss:$8 sps:$4 sm:$0xff]  }
  0x36   :  { %v81_v51 = vshrl.u32 %v80_v50, 7  ;;  %v78_v53 = vld [vmem:[%s748_s2] sm:$0x3]  ;;  %s697_s2 = smov [#allocation8]  }
  0x37   :  { %179 = vmatpush1.bf16.msra.mxu0 %v547_v13  ;;  %426 = vmatpush1.bf16.msra.mxu1 %v568_v22  ;;  %v247_v3 = vld [vmem:[%s750_s4] sm:$0x3]  ;;  %s468_s11 = sshll.u32 %s697_s2, 4  ;;  %s469_s11 = int_to_ptr.vmem [resolvable:$true] %s468_s11 }
  0x38   :  { %180 = vmatprep.subr.bf16.mxu0 %v548_v16  ;;  %427 = vmatprep.subr.bf16.mxu1 %v569_v23  ;;  %v82_v52 = vsub.s32 0, %v81_v51  ;;  %v86_v54 = vsub.s32 1, %v81_v51  ;;  %s665_s12 = scalar_lea.vmem %s469_s11, 256  ;;  %p670_p2 = scmp.lt.s32.totalorder %s469_s11, %s469_s11 }
  0x39   :  { %p666_p1 = scmp.ne.s32.totalorder %s469_s11, %s665_s12  ;;  %p671_p3 = scmp.lt.s32.totalorder %s665_s12, %s665_s12 }
  0x3a   :  { %v83_v55 = vrot.slane %v78_v53, %v82_v52  ;;  %v87_v56 = vrot.slane %v78_v53, %v86_v54  ;;  %v252_v4 = vrot.slane %v247_v3, %v82_v52  ;;  %v256_v5 = vrot.slane %v247_v3, %v86_v54 }
  0x3b   :  { %181 = vmatpush1.bf16.msra.mxu0 %v550_v17  ;;  %428 = vmatpush1.bf16.msra.mxu1 %v571_v26  ;;  %p672_p4 = por %p671_p3, %p670_p2 }
  0x3c   :  { %182 = vmatprep.subr.bf16.mxu0 %v551_v20  ;;  %429 = vmatprep.subr.bf16.mxu1 %v572_v27 }
  0x3d   :  { %p673_p5 = pnand %p672_p4, %p666_p1 }
  0x3f   :  { %183 = vmatpush1.bf16.msra.mxu0 %v553_v21  ;;  %430 = vmatpush1.bf16.msra.mxu1 %v574_v28 }
  0x40   :  { %184 = vmatprep.subr.bf16.mxu0 %v554_v24  ;;  %431 = vmatprep.subr.bf16.mxu1 %v575_v30 }
  0x43   :  { %185 = vmatpush1.bf16.msra.mxu0 %v556_v25  ;;  %432 = vmatpush1.bf16.msra.mxu1 %v577_v31 }
  0x44   :  { %433 = vmatprep.subr.bf16.mxu1 %v578_v32 }
  0x46   :  { %203 = vmatmul.mubr.bf16.vlgmr.msra.gmra.mxu0 %v61_v29 }
  0x47   :  { %434 = vmatpush1.bf16.msra.mxu1 %v580_v33 }
  0x48   :  { %435 = vmatprep.subr.bf16.mxu1 %v581_v34 }
  0x4b   :  { %436 = vmatpush2.bf16.msra.mxu1 %v583_v35 }
  0x4c   :  { %437 = vmatprep.subr.bf16.mxu1 %v584_v36 }
  0x4f   :  { %438 = vmatpush2.bf16.msra.mxu1 %v586_v37 }
  0x50   :  { %439 = vmatprep.subr.bf16.mxu1 %v587_v38 }
  0x53   :  { %440 = vmatpush2.bf16.msra.mxu1 %v589_v39 }
  0x54   :  { %441 = vmatprep.subr.bf16.mxu1 %v590_v40 }
  0x57   :  { %442 = vmatpush2.bf16.msra.mxu1 %v592_v41 }
  0x58   :  { %443 = vmatprep.subr.bf16.mxu1 %v593_v42 }
  0x5b   :  { %444 = vmatpush2.bf16.msra.mxu1 %v595_v43 }
  0x5c   :  { %445 = vmatprep.subr.bf16.mxu1 %v596_v44 }
  0x5f   :  { %446 = vmatpush2.bf16.msra.mxu1 %v598_v45 }
  0x60   :  { %447 = vmatprep.subr.bf16.mxu1 %v599_v46 }
  0x63   :  { %448 = vmatpush2.bf16.msra.mxu1 %v601_v47 }
  0x64   :  { %449 = vmatprep.subr.bf16.mxu1 %v602_v48 }
  0x67   :  { %450 = vmatpush2.bf16.msra.mxu1 %v604_v49 }
 0x106   :  { %v204_v57 = vpop.f32.mrf.mxu0 }
 0x107   :  { %v205_v58 = vadd.f32 %v204_v57, %v83_v55 }
 0x108   :  { %v206_v59 = vpop.f32.mrf.mxu0 }
 0x109   :  { %v207_v60 = vadd.f32 %v206_v59, %v87_v56  ;;  %v211_v61 = vmax.f32 %v205_v58, 0.0 }
 0x10a   :  { %v208_v62 = vpop.f32.mrf.mxu0 }
 0x10b   :  { %v212_v63 = vmax.f32 %v207_v60, 0.0  ;;  %v213_v2 = vpack.c.bf16 %v211_v61, %v211_v61 }
 0x10c   :  { %v209_v0 = vpop.f32.mrf.mxu0 }
 0x10d   :  { %v214_v1 = vpack.c.bf16 %v212_v63, %v212_v63 }
 0x10f   :  { %451 = vmatprep.mubr.bf16.mxu1 %v214_v1 }
 0x110   :  { %452 = vmatmul.mubr.bf16.vlgmr.msra.gmra.mxu1 %v213_v2 }
 0x1d0   :  { %v453_v6 = vpop.f32.mrf.mxu1 }
 0x1d1   :  { %v454_v7 = vadd.f32 %v453_v6, %v252_v4 }
 0x1d2   :  { %v455_v8 = vpop.f32.mrf.mxu1 }
 0x1d3   :  { %460 = vst [vmem:[#allocation8] sm:$0xff] %v454_v7  ;;  %v456_v9 = vadd.f32 %v455_v8, %v256_v5 }
 0x1d4   :  { %v457_v10 = vpop.f32.mrf.mxu1 }
 0x1d5   :  { %461 = vst [vmem:[#allocation8 + $0x8] sm:$0xff] %v456_v9 }
 0x1d6   :  { %v458_v11 = vpop.f32.mrf.mxu1 }
 0x1d7   :  { %676 = shalt.err (!%p673_p5)
}
 0x1d8   :  { %471 = dma.vmem_to_hbm [thread:$0]  %s469_s11, 256, %s751_s5, [#allocation4]  }
 0x1d9   :  { %689 = dma.done.wait [#allocation4], 256  }
 0x1da   :  { %690 = vsyncadd [#allocation4], 4294967040 }
 0x1db   :  { %475 = vsyncpa [#allocation3], 1 }
 0x1dc   :  { %476 = vsyncpa [#allocation6], 1 }
 0x1dd   :  { %477 = vsyncpa [#allocation4], 1 }

</bundles_post_ra>
